<compile_context>
chip_gen: v5e
topology: v5e:2x2
jax: 0.10.0
libtpu: 0.0.40
codegen_flags: <defaults>
</compile_context>

<pallas_src>
import jax
import jax.numpy as jnp
from jax.experimental import pallas as pl
from jax.experimental.pallas import tpu as pltpu

_SUBLANE = 8
_EPS = 1e-12


def _cdiv(a, b):
    return -(-a // b)


def _round_up(n, m):
    return ((n + m - 1) // m) * m


def _hypersphere_kernel(x_ref, w_ref, b_ref, o_ref):
    # Linear: [tb, E_in] @ [E_in, E_out] + [1, E_out]  (MXU, f32 accumulate).
    y = jnp.dot(x_ref[...], w_ref[...], preferred_element_type=jnp.float32)
    y = y + b_ref[...].astype(jnp.float32)

    # F.normalize(p=2, dim=1, eps=1e-12): y / max(||y||_2, eps)
    #   == y * rsqrt(max(sum(y^2), eps^2))   (single EUP op, no VALU divide).
    sumsq = jnp.sum(y * y, axis=-1, keepdims=True)
    inv = jax.lax.rsqrt(jnp.maximum(sumsq, jnp.float32(_EPS * _EPS)))
    o_ref[...] = (y * inv).astype(o_ref.dtype)


def single_layer_hypersphere_pallas(x, weight_t, bias, *, block_b=4096):
    """x: [B, E_in], weight_t: [E_in, E_out] (transposed nn.Linear weight), bias: [E_out]."""
    B, E_in = x.shape
    E_out = weight_t.shape[1]
    dtype_bytes = jnp.dtype(x.dtype).itemsize

    # Batch tile: multiple of 8 (sublane), capped by block_b, and sized so that the
    # "parallel" grid axis has >= 8 tiles when B permits (keeps both v7x TCs busy).
    tb = min(block_b, _round_up(_cdiv(B, 8), _SUBLANE))
    tb = max(_SUBLANE, (tb // _SUBLANE) * _SUBLANE)
    grid = (_cdiv(B, tb),)  # trailing partial tile: Pallas clips/masks output writes

    bias2d = bias.reshape(1, E_out)

    # VMEM footprint (double-buffered x/out tiles + pinned weight/bias + f32 temps).
    # Tiny (< 6 MiB even at tb=4096); set the limit to 2x footprint for headroom.
    vmem_bytes = (2 * tb * (E_in + E_out) * dtype_bytes
                  + 2 * E_in * E_out * dtype_bytes
                  + 2 * E_out * dtype_bytes
                  + 8 * tb * E_out)  # f32 intermediates (y, y*inv)
    vmem_limit = int(max(2 * vmem_bytes, 4 << 20))

    return pl.pallas_call(
        _hypersphere_kernel,
        out_shape=jax.ShapeDtypeStruct((B, E_out), x.dtype),
        grid_spec=pltpu.PrefetchScalarGridSpec(
            num_scalar_prefetch=0,
            grid=grid,
            in_specs=[
                pl.BlockSpec((tb, E_in), lambda i: (i, 0)),      # batch-tiled x
                pl.BlockSpec((E_in, E_out), lambda i: (0, 0)),   # pinned weight
                pl.BlockSpec((1, E_out), lambda i: (0, 0)),      # pinned bias
            ],
            out_specs=pl.BlockSpec((tb, E_out), lambda i: (i, 0)),
        ),
        compiler_params=pltpu.CompilerParams(
            dimension_semantics=("parallel",),  # independent batch tiles; v7x megacore
            vmem_limit_bytes=vmem_limit,
        ),
    )(x, weight_t, bias2d)


def single_layer_hypersphere(x, weight_t, bias, *, min_rows_for_pallas=1024):
    """Dispatcher: for small batches XLA's fused matmul+normalize is already near the
    HBM roofline, so the standalone pallas_call only pays off at larger batches."""
    if x.shape[0] < min_rows_for_pallas:
        return _reference(x, weight_t, bias)
    return single_layer_hypersphere_pallas(x, weight_t, bias)


def _reference(x, weight_t, bias):
    y = x.astype(jnp.float32) @ weight_t.astype(jnp.float32) + bias.astype(jnp.float32)
    norm = jnp.maximum(jnp.linalg.norm(y, axis=1, keepdims=True), _EPS)
    return (y / norm).astype(x.dtype)


if __name__ == "__main__":
    # configs: EMBEDDINGS_SIZE=32, output_EMBEDDINGS_SIZE=32, batch=8
    B, E_in, E_out = 8, 32, 32

    key = jax.random.PRNGKey(0)
    kx, kw, kb, kx2 = jax.random.split(key, 4)

    x = jax.random.normal(kx, (B, E_in), dtype=jnp.float32)

    # Deterministic init mimicking nn.Linear default (uniform in +/- 1/sqrt(fan_in)).
    bound = 1.0 / (E_in ** 0.5)
    # PyTorch stores weight as [E_out, E_in]; we keep it pre-transposed for the kernel.
    weight = jax.random.uniform(kw, (E_out, E_in), minval=-bound, maxval=bound, dtype=jnp.float32)
    bias = jax.random.uniform(kb, (E_out,), minval=-bound, maxval=bound, dtype=jnp.float32)
    weight_t = weight.T  # [E_in, E_out]

    # --- run the Pallas kernel at the module's config shape ---
    out = single_layer_hypersphere_pallas(x, weight_t, bias)
    out = jax.block_until_ready(out)
    ref = _reference(x, weight_t, bias)
    assert out.shape == (B, E_out)
    assert jnp.allclose(out, ref, atol=1e-5, rtol=1e-5), "mismatch vs reference (small batch)"
    assert jnp.allclose(jnp.linalg.norm(out, axis=1), 1.0, atol=1e-5)

    # --- exercise batch tiling + partial trailing tile (B not a multiple of tb) ---
    B2 = 513
    x2 = jax.random.normal(kx2, (B2, E_in), dtype=jnp.float32)
    out2 = single_layer_hypersphere_pallas(x2, weight_t, bias)
    out2 = jax.block_until_ready(out2)
    ref2 = _reference(x2, weight_t, bias)
    assert out2.shape == (B2, E_out)
    assert jnp.allclose(out2, ref2, atol=1e-5, rtol=1e-5), "mismatch vs reference (tiled batch)"
    assert jnp.allclose(jnp.linalg.norm(out2, axis=1), 1.0, atol=1e-5)

    print("KERNEL_OK")
</pallas_src>

<mosaic_0001>
module attributes {stable_mosaic.version = 11 : i64} {
  func.func @_hypersphere_kernel(%arg0: i32, %arg1: memref<8x32xf32, #tpu.memory_space<vmem>>, %arg2: memref<32x32xf32, #tpu.memory_space<vmem>>, %arg3: memref<1x32xf32, #tpu.memory_space<vmem>>, %arg4: memref<8x32xf32, #tpu.memory_space<vmem>>) attributes {dimension_semantics = [#tpu.dimension_semantics<parallel>], iteration_bounds = array<i64: 1>, scalar_prefetch = 0 : i64, scratch_operands = 0 : i64, tpu.core_type = #tpu.core_type<tc>, window_params = [{transform_indices = @transform_0, window_bounds = array<i64: 8, 32>}, {pipeline_mode = #tpu.pipeline_mode<synchronous>, transform_indices = @transform_1, window_bounds = array<i64: 32, 32>}, {pipeline_mode = #tpu.pipeline_mode<synchronous>, transform_indices = @transform_2, window_bounds = array<i64: 1, 32>}, {transform_indices = @transform_3, window_bounds = array<i64: 8, 32>}]} {
    %c0 = arith.constant 0 : index
    %c0_0 = arith.constant 0 : index
    %0 = vector.load %arg1[%c0, %c0_0] : memref<8x32xf32, #tpu.memory_space<vmem>>, vector<8x32xf32>
    %c0_1 = arith.constant 0 : index
    %c0_2 = arith.constant 0 : index
    %1 = vector.load %arg2[%c0_1, %c0_2] : memref<32x32xf32, #tpu.memory_space<vmem>>, vector<32x32xf32>
    %cst = arith.constant dense<0.000000e+00> : vector<8x32xf32>
    %2 = tpu.matmul %0, %1, %cst {dimension_numbers = #tpu.dot_dimension_numbers<[1], [0], [0], [1], [0, 0, 1, 1], [], []>} : vector<8x32xf32>, vector<32x32xf32>, vector<8x32xf32> -> vector<8x32xf32>
    %c0_3 = arith.constant 0 : index
    %c0_4 = arith.constant 0 : index
    %3 = vector.load %arg3[%c0_3, %c0_4] : memref<1x32xf32, #tpu.memory_space<vmem>>, vector<1x32xf32>
    %4 = vector.broadcast %3 : vector<1x32xf32> to vector<8x32xf32>
    %5 = arith.addf %2, %4 : vector<8x32xf32>
    %6 = arith.mulf %5, %5 : vector<8x32xf32>
    %cst_5 = arith.constant dense<0.000000e+00> : vector<8xf32>
    %7 = vector.multi_reduction <add>, %6, %cst_5 [1] : vector<8x32xf32> to vector<8xf32>
    %8 = vector.shape_cast %7 : vector<8xf32> to vector<8x1xf32>
    %cst_6 = arith.constant 1.000000e-24 : f32
    %9 = vector.broadcast %cst_6 : f32 to vector<8x1xf32>
    %10 = arith.maximumf %8, %9 : vector<8x1xf32>
    %11 = math.rsqrt %10 : vector<8x1xf32>
    %12 = vector.broadcast %11 : vector<8x1xf32> to vector<8x32xf32>
    %13 = arith.mulf %5, %12 : vector<8x32xf32>
    %c0_7 = arith.constant 0 : index
    %c0_8 = arith.constant 0 : index
    %14 = vector.load %arg4[%c0_7, %c0_8] : memref<8x32xf32, #tpu.memory_space<vmem>>, vector<8x32xf32>
    tpu.vector_store %arg4[%c0_7, %c0_8], %13 {strides = array<i32>} : memref<8x32xf32, #tpu.memory_space<vmem>>, vector<8x32xf32>,
    return
  }
  func.func @transform_0(%arg0: i32) -> (i32, i32) {
    %c0_i32 = arith.constant 0 : i32
    %c0_i32_0 = arith.constant 0 : i32
    return %arg0, %c0_i32 : i32, i32
  }
  func.func @transform_1(%arg0: i32) -> (i32, i32) {
    %c0_i32 = arith.constant 0 : i32
    %c0_i32_0 = arith.constant 0 : i32
    %c0_i32_1 = arith.constant 0 : i32
    return %c0_i32, %c0_i32_0 : i32, i32
  }
  func.func @transform_2(%arg0: i32) -> (i32, i32) {
    %c0_i32 = arith.constant 0 : i32
    %c0_i32_0 = arith.constant 0 : i32
    %c0_i32_1 = arith.constant 0 : i32
    return %c0_i32, %c0_i32_0 : i32, i32
  }
  func.func @transform_3(%arg0: i32) -> (i32, i32) {
    %c0_i32 = arith.constant 0 : i32
    %c0_i32_0 = arith.constant 0 : i32
    return %arg0, %c0_i32 : i32, i32
  }
}

</mosaic_0001>

<bundles_post_ra>
// kernel: tpu_custom_call.1
= control target key start
LH: loop header
LB: loop body
LE: loop exit
PB: predicated region body
PF: predicated region fallthrough
CT: control target
= control target key end

     0   :  { %8 = vsyncpa [#allocation3], 0  ;;  %s240_s0 = inlined_call_operand.hbm [shape: f32[8,32], index: 0, kind: input, shape index: {}]   ;;  %s241_s1 = inlined_call_operand.hbm [shape: f32[32,32], index: 1, kind: input, shape index: {}]   ;;  %s242_s2 = inlined_call_operand.vmem [shape: f32[1,32], index: 2, kind: input, shape index: {}]   ;;  %s243_s3 = inlined_call_operand.hbm [shape: f32[8,32], index: 3, kind: output, shape index: {}]  }
   0x1   :  { %9 = vsyncpa [#allocation6], 0 }
   0x2   :  { %10 = vsyncpa [#allocation4], 0  ;;  %s16_s14 = sshll.u32 %s240_s0, 4  ;;  %s200_s15 = smov [#allocation2]   ;;  %s17_s14 = int_to_ptr.hbm [resolvable:$true] %s16_s14 }
   0x3   :  { %s18_s16 = sshll.u32 %s200_s15, 4  ;;  %s26_s19 = sshll.u32 %s241_s1, 4  ;;  %s19_s16 = int_to_ptr.vmem [resolvable:$true] %s18_s16  ;;  %s27_s19 = int_to_ptr.hbm [resolvable:$true] %s26_s19 }
   0x4   :  { %21 = dma.hbm_to_vmem [thread:$0]  %s17_s14, 128, %s19_s16, [#allocation3]  }
   0x5   :  { %s201_s20 = smov [#allocation5]   ;;  %s202_s22 = smov 128  }
   0x6   :  { %s28_s21 = sshll.u32 %s201_s20, 4  ;;  %s203_s23 = smov 8   ;;  %s29_s21 = int_to_ptr.vmem [resolvable:$true] %s28_s21 }
   0x7   :  { %34 = dma.hbm_to_vmem [thread:$0]  %s27_s19, 512, %s29_s21, [#allocation6], %s202_s22, %s202_s22, %s203_s23  }
   0x8   :  { %194 = dma.done.wait [#allocation3], 128  }
   0x9   :  { %195 = vsyncadd [#allocation3], 4294967168 }
   0xa   :  { %196 = dma.done.wait [#allocation6], 512  }
   0xb   :  { %197 = vsyncadd [#allocation6], 4294966784  ;;  %v49_v0 = vld [vmem:[#allocation5 + $0x18] sm:$0xff]  ;;  %v48_v1 = vld [vmem:[#allocation5 + $0x10] sm:$0xff]  ;;  %vm54_vm0 = vcmask 261120   ;;  %s204_s24 = smov [#allocation7]  }
   0xc   :  { %70 = vmatpush.msra.mxu0 %v49_v0  ;;  %v47_v2 = vld [vmem:[#allocation5 + $0x8] sm:$0xff]  ;;  %v46_v3 = vld [vmem:[#allocation5] sm:$0xff]  ;;  %v45_v4 = vld [vmem:[#allocation2] sm:$0xff]  ;;  %s100_s25 = sshll.u32 %s204_s24, 4  ;;  %s102_s27 = sshll.u32 %s243_s3, 4  ;;  %s101_s25 = int_to_ptr.vmem [resolvable:$true] %s100_s25  ;;  %s103_s27 = int_to_ptr.hbm [resolvable:$true] %s102_s27 }
   0xd   :  { %v119_v5 = vld [vmem:[%s242_s2] ss:$0 sm:$0xff] }
   0xe   :  { %71 = vmatpush.msra.mxu0 %v48_v1 }
  0x10   :  { %72 = vmatpush.msra.mxu0 %v47_v2 }
  0x12   :  { %73 = vmatpush.msra.mxu0 %v46_v3 }
  0x13   :  { %113 = vmatmul.msk.f32.vlgmr.msra.gmra.mxu0 %vm54_vm0, %v45_v4 }
  0x90   :  { %v75_v6 = vpop.f32.mrf.mxu0 }
  0x91   :  { %v76_v7 = vadd.f32 %v119_v5, %v75_v6 }
  0x93   :  { %v78_v8 = vmul.f32 %v76_v7, %v76_v7 }
  0x95   :  { %v79_v9 = vsel %vm54_vm0, %v78_v8, 0.0 }
  0x96   :  { %80 = vadd.xlane.f32.xlu0 %v79_v9 }
 0x109   :  { %v81_v10 = vpop.xlane.xlu0 %80 }
 0x10a   :  { %v82_v11 = vmax.f32 %v81_v10, 1e-24 }
 0x10c   :  { %120 = vrsqrt.f32 %v82_v11  ;;  %vm89_vm2 = vweird.f32 %v82_v11 }
 0x112   :  { %v121_v12 = vpop.eup %120 }
 0x113   :  { %v84_v13 = vmul.f32 %v121_v12, %v82_v11  ;;  %vm90_vm1 = vweird.f32 %v121_v12 }
 0x114   :  { %vm91_vm3 = vmor %vm89_vm2, %vm90_vm1 }
 0x115   :  { %v85_v14 = vmul.f32 %v121_v12, %v84_v13 }
 0x117   :  { %v86_v15 = vmul.f32 0.5, %v85_v14 }
 0x119   :  { %v87_v16 = vsub.f32 1.5, %v86_v15 }
 0x11b   :  { %v88_v17 = vmul.f32 %v121_v12, %v87_v16 }
 0x11d   :  { %v92_v18 = vsel %vm91_vm3, %v121_v12, %v88_v17 }
 0x11e   :  { %v93_v19 = vmul.f32 %v92_v18, %v76_v7 }
 0x120   :  { %94 = vst.msk [vmem:[#allocation7] sm:$0xff] %vm54_vm0, %v93_v19 }
 0x121   :  { %105 = dma.vmem_to_hbm [thread:$0]  %s101_s25, 128, %s103_s27, [#allocation4]  }
 0x122   :  { %198 = dma.done.wait [#allocation4], 128  }
 0x123   :  { %199 = vsyncadd [#allocation4], 4294967168 }
 0x124   :  { %110 = vsyncpa [#allocation3], 1 }
 0x125   :  { %111 = vsyncpa [#allocation6], 1 }
 0x126   :  { %112 = vsyncpa [#allocation4], 1 }

</bundles_post_ra>
